<compile_context>
chip_gen: v5e
topology: v5e:2x2
jax: 0.10.0
libtpu: 0.0.40
codegen_flags: <defaults>
</compile_context>

<pallas_src>
import jax
import jax.numpy as jnp
from jax.experimental import pallas as pl
from jax.experimental.pallas import tpu as pltpu

# ----- deterministic quantization parameters (per-tensor affine / symmetric) -----
S_IN,  ZP_IN  = 0.05, 128.0   # QuantStub: input quantized to quint8
S_W            = 0.02         # weight qint8, symmetric (zero_point = 0)
S_OUT, ZP_OUT = 0.10, 128.0   # quantized-conv output requant (quint8)

# Folded constants (baked into the kernel).
INV_S_IN = 1.0 / S_IN
REQUANT  = (S_IN * S_W) / S_OUT               # acc(int) -> output quant units
QMIN_IN,  QMAX_IN  = -ZP_IN,  255.0 - ZP_IN   # centered quint8 input range
QMIN_OUT, QMAX_OUT = -ZP_OUT, 255.0 - ZP_OUT  # centered quint8 output range

TS_MAX = 32768        # max spatial pixels per grid step (multiple of 128)
NB_MAX = 8            # max batch samples per grid step (unrolled in-kernel)
STEP_BYTES_TARGET = 3 << 20   # aim ~3 MiB of (padded) HBM traffic per step


def _round_up(x, m):
    return ((x + m - 1) // m) * m


def quant_conv1x1_kernel(x_ref, w_ref, b_ref, o_ref):
    # x_ref : (Nb, Cin, TS)  float32 raw input tile (spatial on lanes)
    # w_ref : (Cout, Cin)    float32 holding int8-valued quantized weights
    # b_ref : (Cout, 1)      float32 holding int32-valued quantized bias
    # o_ref : (Nb, Cout, TS) float32 dequantized output tile
    w = w_ref[...].astype(jnp.bfloat16)        # exact: |w| <= 127
    b = b_ref[...]

    # Static, short unrolled loop over the batch samples in this block.
    for i in range(x_ref.shape[0]):
        # QuantStub with the zero-point folded into the clamp bounds:
        #   qx_centered = clip(round(x/s_in), -zp_in, 255-zp_in) == q_x - zp_in
        qx = jnp.clip(jnp.round(x_ref[i] * INV_S_IN), QMIN_IN, QMAX_IN)

        # Quantized 1x1 conv: integer-valued accumulate on the MXU with
        # spatial as the minor (lane-dense) output dim, plus int32 bias.
        # bf16 operands are exact (integers, |.| <= 255); f32 accumulation.
        acc = jnp.dot(w, qx.astype(jnp.bfloat16),
                      preferred_element_type=jnp.float32) + b

        # Requantize (output zero-point folded into clamp bounds), DeQuantStub.
        qy = jnp.clip(jnp.round(acc * REQUANT), QMIN_OUT, QMAX_OUT)
        o_ref[i] = S_OUT * qy                  # (Cout, TS), dense store


def quantization_wrapper_forward(x_nchw, q_w, q_b, *, ts_max=TS_MAX):
    """Forward of PyTorchQuantizationWrapper(Conv2d(Cin, Cout, kernel_size=1)).

    x_nchw: (N, C_in, H, W) float32
    q_w   : (C_in, C_out)   float32 (int8-valued quantized weights)
    q_b   : (C_out,)        float32 (int32-valued quantized bias)
    returns (N, C_out, H, W) float32
    """
    N, Cin, H, W = x_nchw.shape
    Cout = q_w.shape[1]
    S = H * W

    # Exact-integer-in-f32 guard: |acc| <= Cin * 128 * 127 must stay < 2^24.
    assert Cin * 128 * 127 < (1 << 24), "Cin too large for exact f32 accumulation"

    # NCHW -> (N, Cin, H*W): contiguous reshape, no transpose, no extra HBM pass.
    x = x_nchw.reshape(N, Cin, S)

    if S > ts_max:
        # Large images: tile the spatial axis, one sample per step.
        ts, nb = ts_max, 1
    else:
        # Small images: take the full spatial extent (== full array dim, so
        # the (8,128) rule is satisfied even if S % 128 != 0) and block
        # several batch samples per step to amortize per-step overhead.
        ts = S
        padded_step_bytes = 4 * (_round_up(Cin, 8) + _round_up(Cout, 8)) * _round_up(ts, 128)
        nb = max(1, min(N, NB_MAX, STEP_BYTES_TARGET // max(padded_step_bytes, 1)))
        if N >= 2:
            # Keep >= 2 grid steps so both v7x TensorCores get work.
            nb = min(nb, -(-N // 2))

    n_tiles = pl.cdiv(N, nb)
    s_tiles = pl.cdiv(S, ts)

    # No wrapper-side pad/slice: boundary blocks (if any) are partial; Pallas
    # masks the writeback, and the garbage columns only feed garbage columns.
    out = pl.pallas_call(
        quant_conv1x1_kernel,
        out_shape=jax.ShapeDtypeStruct((N, Cout, S), jnp.float32),
        grid_spec=pltpu.PrefetchScalarGridSpec(
            num_scalar_prefetch=0,
            grid=(n_tiles, s_tiles),
            in_specs=[
                pl.BlockSpec((nb, Cin, ts), lambda n, s: (n, 0, s)),   # input tile
                pl.BlockSpec((Cout, Cin),   lambda n, s: (0, 0)),      # weights (resident)
                pl.BlockSpec((Cout, 1),     lambda n, s: (0, 0)),      # bias (resident)
            ],
            out_specs=pl.BlockSpec((nb, Cout, ts), lambda n, s: (n, 0, s)),
        ),
        compiler_params=pltpu.CompilerParams(
            dimension_semantics=("parallel", "parallel"),
            vmem_limit_bytes=32 << 20),
    )(x, q_w.T, q_b.reshape(Cout, 1))

    # (N, Cout, H*W) -> NCHW: free reshape.
    return out.reshape(N, Cout, H, W)


def _reference(x_nchw, q_w, q_b):
    """Pure-JAX reference with identical constant folding (exact match)."""
    N, Cin, H, W = x_nchw.shape
    Cout = q_w.shape[1]
    qx = jnp.clip(jnp.round(x_nchw * INV_S_IN), QMIN_IN, QMAX_IN)      # (N,Cin,H,W)
    acc = jnp.einsum("nchw,co->nohw", qx, q_w) + q_b.reshape(1, Cout, 1, 1)
    qy = jnp.clip(jnp.round(acc * REQUANT), QMIN_OUT, QMAX_OUT)
    return S_OUT * qy


if __name__ == "__main__":
    key = jax.random.PRNGKey(0)
    k_x, k_w, k_b = jax.random.split(key, 3)

    N, C_IN, H, W = 2, 4, 16, 16
    C_OUT = 8

    # Example input (what the wrapper's forward receives).
    x = jax.random.normal(k_x, (N, C_IN, H, W), dtype=jnp.float32)

    # Deterministic synthetic parameters for the inner Conv2d(4, 8, kernel_size=1),
    # pre-quantized: symmetric qint8 weights, int32 bias in (s_in * s_w) units.
    # TODO(synk): QuantStub/DeQuantStub observer calibration has no Pallas
    # equivalent; fixed per-tensor scales/zero-points stand in for it.
    w_float = 0.1 * jax.random.normal(k_w, (C_IN, C_OUT), dtype=jnp.float32)
    b_float = 0.05 * jax.random.normal(k_b, (C_OUT,), dtype=jnp.float32)
    q_w = jnp.clip(jnp.round(w_float / S_W), -127.0, 127.0).astype(jnp.float32)
    q_b = jnp.round(b_float / (S_IN * S_W)).astype(jnp.float32)

    out = quantization_wrapper_forward(x, q_w, q_b)
    jax.block_until_ready(out)
    assert out.shape == (N, C_OUT, H, W)

    ref = _reference(x, q_w, q_b)
    assert jnp.allclose(out, ref, atol=1e-4), "mismatch vs reference"

    print("KERNEL_OK")
</pallas_src>

<mosaic_0001>
module attributes {stable_mosaic.version = 11 : i64} {
  func.func @quant_conv1x1_kernel(%arg0: i32, %arg1: i32, %arg2: memref<1x4x256xf32, #tpu.memory_space<vmem>>, %arg3: memref<8x4xf32, #tpu.memory_space<vmem>>, %arg4: memref<8x1xf32, #tpu.memory_space<vmem>>, %arg5: memref<1x8x256xf32, #tpu.memory_space<vmem>>) attributes {dimension_semantics = [#tpu.dimension_semantics<parallel>, #tpu.dimension_semantics<parallel>], iteration_bounds = array<i64: 2, 1>, scalar_prefetch = 0 : i64, scratch_operands = 0 : i64, tpu.core_type = #tpu.core_type<tc>, window_params = [{transform_indices = @transform_0, window_bounds = array<i64: 1, 4, 256>}, {pipeline_mode = #tpu.pipeline_mode<synchronous>, transform_indices = @transform_1, window_bounds = array<i64: 8, 4>}, {pipeline_mode = #tpu.pipeline_mode<synchronous>, transform_indices = @transform_2, window_bounds = array<i64: 8, 1>}, {transform_indices = @transform_3, window_bounds = array<i64: 1, 8, 256>}]} {
    %c0 = arith.constant 0 : index
    %c0_0 = arith.constant 0 : index
    %0 = vector.load %arg3[%c0, %c0_0] : memref<8x4xf32, #tpu.memory_space<vmem>>, vector<8x4xf32>
    %1 = arith.truncf %0 : vector<8x4xf32> to vector<8x4xbf16>
    %c0_1 = arith.constant 0 : index
    %c0_2 = arith.constant 0 : index
    %2 = vector.load %arg4[%c0_1, %c0_2] : memref<8x1xf32, #tpu.memory_space<vmem>>, vector<8x1xf32>
    %c0_3 = arith.constant 0 : index
    %c0_4 = arith.constant 0 : index
    %c0_5 = arith.constant 0 : index
    %3 = vector.load %arg2[%c0_3, %c0_4, %c0_5] : memref<1x4x256xf32, #tpu.memory_space<vmem>>, vector<1x4x256xf32>
    %4 = vector.shape_cast %3 : vector<1x4x256xf32> to vector<4x256xf32>
    %cst = arith.constant 2.000000e+01 : f32
    %5 = vector.broadcast %cst : f32 to vector<4x256xf32>
    %6 = arith.mulf %4, %5 : vector<4x256xf32>
    %7 = math.roundeven %6 : vector<4x256xf32>
    %cst_6 = arith.constant -1.280000e+02 : f32
    %cst_7 = arith.constant 1.270000e+02 : f32
    %8 = vector.broadcast %cst_6 : f32 to vector<4x256xf32>
    %9 = arith.maximumf %8, %7 : vector<4x256xf32>
    %10 = vector.broadcast %cst_7 : f32 to vector<4x256xf32>
    %11 = arith.minimumf %10, %9 : vector<4x256xf32>
    %12 = arith.truncf %11 : vector<4x256xf32> to vector<4x256xbf16>
    %cst_8 = arith.constant dense<0.000000e+00> : vector<8x256xf32>
    %13 = tpu.matmul %1, %12, %cst_8 {dimension_numbers = #tpu.dot_dimension_numbers<[1], [0], [0], [1], [0, 0, 1, 1], [], []>} : vector<8x4xbf16>, vector<4x256xbf16>, vector<8x256xf32> -> vector<8x256xf32>
    %14 = vector.broadcast %2 : vector<8x1xf32> to vector<8x256xf32>
    %15 = arith.addf %13, %14 : vector<8x256xf32>
    %cst_9 = arith.constant 0.00999999977 : f32
    %16 = vector.broadcast %cst_9 : f32 to vector<8x256xf32>
    %17 = arith.mulf %15, %16 : vector<8x256xf32>
    %18 = math.roundeven %17 : vector<8x256xf32>
    %cst_10 = arith.constant -1.280000e+02 : f32
    %cst_11 = arith.constant 1.270000e+02 : f32
    %19 = vector.broadcast %cst_10 : f32 to vector<8x256xf32>
    %20 = arith.maximumf %19, %18 : vector<8x256xf32>
    %21 = vector.broadcast %cst_11 : f32 to vector<8x256xf32>
    %22 = arith.minimumf %21, %20 : vector<8x256xf32>
    %cst_12 = arith.constant 1.000000e-01 : f32
    %23 = vector.broadcast %cst_12 : f32 to vector<8x256xf32>
    %24 = arith.mulf %23, %22 : vector<8x256xf32>
    %c0_13 = arith.constant 0 : index
    %c0_14 = arith.constant 0 : index
    %c0_15 = arith.constant 0 : index
    %25 = vector.load %arg5[%c0_13, %c0_14, %c0_15] : memref<1x8x256xf32, #tpu.memory_space<vmem>>, vector<1x8x256xf32>
    %26 = vector.shape_cast %25 : vector<1x8x256xf32> to vector<8x256xf32>
    %27 = vector.shape_cast %24 : vector<8x256xf32> to vector<1x8x256xf32>
    tpu.vector_store %arg5[%c0_13, %c0_14, %c0_15], %27 {strides = array<i32>} : memref<1x8x256xf32, #tpu.memory_space<vmem>>, vector<1x8x256xf32>,
    return
  }
  func.func @transform_0(%arg0: i32, %arg1: i32) -> (i32, i32, i32) {
    %c0_i32 = arith.constant 0 : i32
    %c0_i32_0 = arith.constant 0 : i32
    return %arg0, %c0_i32, %arg1 : i32, i32, i32
  }
  func.func @transform_1(%arg0: i32, %arg1: i32) -> (i32, i32) {
    %c0_i32 = arith.constant 0 : i32
    %c0_i32_0 = arith.constant 0 : i32
    %c0_i32_1 = arith.constant 0 : i32
    return %c0_i32, %c0_i32_0 : i32, i32
  }
  func.func @transform_2(%arg0: i32, %arg1: i32) -> (i32, i32) {
    %c0_i32 = arith.constant 0 : i32
    %c0_i32_0 = arith.constant 0 : i32
    %c0_i32_1 = arith.constant 0 : i32
    return %c0_i32, %c0_i32_0 : i32, i32
  }
  func.func @transform_3(%arg0: i32, %arg1: i32) -> (i32, i32, i32) {
    %c0_i32 = arith.constant 0 : i32
    %c0_i32_0 = arith.constant 0 : i32
    return %arg0, %c0_i32, %arg1 : i32, i32, i32
  }
}

</mosaic_0001>

<bundles_post_ra>
// kernel: tpu_custom_call.1
= control target key start
LH: loop header
LB: loop body
LE: loop exit
PB: predicated region body
PF: predicated region fallthrough
CT: control target
= control target key end

     0   :  { %8 = vsyncpa [#allocation3], 0  ;;  %s672_s0 = inlined_call_operand.vmem [shape: f32[2,4,256], index: 0, kind: input, shape index: {}]   ;;  %s673_s1 = inlined_call_operand.vmem [shape: f32[8,4], index: 1, kind: input, shape index: {}]   ;;  %s674_s2 = inlined_call_operand.vmem [shape: f32[8,1], index: 2, kind: input, shape index: {}]   ;;  %s675_s3 = inlined_call_operand.hbm [shape: f32[2,8,256], index: 3, kind: output, shape index: {}]  }
   0x1   :  { %10 = vsyncpa [#allocation3 + $0x1], 0  ;;  %s565_s12 = smov 0   ;;  %s567_s13 = smov 0  }
   0x2   :  { %s569_s14 = smov 0   ;;  %s571_s15 = smov 0  }
   0x3   :  { %s573_s16 = smov 0   ;;  %s575_s17 = smov 0  }
   0x4 LB: > { %s366_s18 = sadd.s32 4294967295, %s542_s17   ;;  %s367_s19 = sadd.s32 4294967294, %s542_s17   ;;  %s542_s17 = sphi %s575_s17, %s16_s17   ;;  %s538_s16 = sphi %s573_s16, %s682_s16   ;;  %s534_s15 = sphi %s571_s15, %s681_s15   ;;  %s530_s14 = sphi %s569_s14, %s680_s14   ;;  %s526_s13 = sphi %s567_s13, %s679_s13   ;;  %s522_s12 = sphi %s565_s12, %s678_s12  }
   0x5   : > { %s28_s20 = sadd.s32 1, %s538_s16  ;;  %s107_s21 = sadd.s32 1, %s530_s14 }
   0x6   : > { %p30_p0 = scmp.ge.s32.totalorder %s28_s20, 2  ;;  %p117_p1 = scmp.ne.s32.totalorder %s530_s14, %s526_s13 }
   0x7   : > { %p118_p2 = scmp.eq.s32.totalorder %s366_s18, 1  ;;  %p123_p3 = scmp.ne.s32.totalorder %s526_s13, %s522_s12 }
   0x8   : > { %s684_s20 = smov (%p30_p0, %s28_s20), 0  ;;  %p124_p5 = scmp.eq.s32.totalorder %s367_s19, 1 }
   0x9   : > { %p605_p4 = por %p118_p2, %p117_p1  ;;  %s102_s23 = ssub.s32 %s538_s16, %s684_s20 }
   0xa   : > { %p370_p6 = scmp.ge.s32.totalorder %s542_s17, 1  ;;  %p105_p7 = scmp.eq.s32.totalorder %s102_s23, 0 }
   0xb   : > { %p612_p8 = por %p124_p5, %p123_p3  ;;  %p161_p9 = scmp.lt.s32.totalorder %s542_s17, 3 }
   0xc   : > { %s618_s25 = scalar_select %p105_p7, %s530_s14, %s107_s21  }
   0xd   : > { %p162_p10 = pnand %p370_p6, %p161_p9 }
   0xe   : > { %p190_p11 = scmp.lt.s32.totalorder (!%p162_p10), %s534_s15, 1  ;;  %s186_s8 = sand.u32 (!%p162_p10), 1, %s526_s13  }
   0xf   : > { %165 = sbr.rel (%p162_p10) target bundleno = 203 (0xcb), region = 32  ;;  %s371_s9 = sshll.u32 (!%p162_p10), %s186_s8, 4 }
  0x10   : > { %s382_s10 = sshll.u32 (!%p162_p10), %s534_s15, 4  ;;  %s188_s21 = scalar_lea.vmem (!%p162_p10), [#allocation2], %s371_s9 }
  0x11   : > { %s285_s19 = scalar_lea.hbm (!%p162_p10), %s675_s3, %s382_s10  ;;  %s287_s23 = sshll.u32 (!%p162_p10), %s188_s21, 4  ;;  %s288_s23 = int_to_ptr.vmem [resolvable:$true] %s287_s23 }
  0x12   : > { %s484_s4 = scalar_lea.hbm (!%p162_p10), %s675_s3, 32 }
  0x14   : > { %s191_s26 = scalar_select %p190_p11, %s534_s15, 1  ;;  %v203_v0 = vld [vmem:[%s674_s2] sm:$0xff]  ;;  %v544_v1 = vmov 0   ;;  %vm226_vm1 = vcmask 1041408   ;;  %vm222_vm2 = vcmask 31744  }
  0x15   : > { %463 = vset.pattern.permute.xlu0 %v544_v1  ;;  %v201_v13 = vld [vmem:[%s673_s1] sm:$0xff]  ;;  %s272_s15 = scalar_lea.sflag [#allocation3], %s186_s8 }
  0x16   : > { %s381_s27 = sshll.u32 %s191_s26, 3  ;;  %219 = vperm.xlu0 %463, %v203_v0   ;;  %v202_v20 = vpack.c.bf16 %v201_v13, %v201_v13  ;;  %s289_s26 = sshll.u32 %s285_s19, 4  ;;  %s290_s26 = int_to_ptr.hbm [resolvable:$true] %s289_s26 }
  0x17   : > { %s197_s5 = scalar_lea.vmem %s672_s0, %s381_s27  ;;  %s478_s27 = sshra.s32 %s290_s26, 4  ;;  %s479_s27 = int_to_ptr.hbm [resolvable:$true] %s478_s27 }
  0x18   : > { %v204_v2 = vld [vmem:[%s197_s5] sm:$0xff]  ;;  %s480_s28 = scalar_lea.hbm %s479_s27, 16  ;;  %p485_p1 = scmp.lt.s32.totalorder %s479_s27, %s675_s3 }
  0x19   : > { %v205_v3 = vmul.f32 20.0, %v204_v2  ;;  %p481_p12 = scmp.ne.s32.totalorder %s479_s27, %s480_s28  ;;  %p486_p2 = scmp.lt.s32.totalorder %s484_s4, %s480_s28 }
  0x1b   : > { %v385_v4 = vcvt.f32.s32 %v205_v3  ;;  %v383_v5 = vand.u32 2147483647, %v205_v3  ;;  %v388_v7 = vand.u32 2147483648, %v205_v3  ;;  %p482_p13 = pnand %p481_p12, %p605_p4  ;;  %p487_p3 = por %p486_p2, %p485_p1 }
  0x1d   : > { %v386_v6 = vcvt.s32.f32 %v385_v4  ;;  %vm384_vm0 = vcmp.lt.f32.partialorder %v383_v5, 8388608.0  ;;  %p483_p0 = pneg %p482_p13 }
  0x1f   : > { %v387_v8 = vand.u32 2147483647, %v386_v6  ;;  %p488_p5 = pnand %p487_p3, %p483_p0 }
  0x21   : > { %v389_v9 = vor.u32 %v388_v7, %v387_v8 }
  0x23   : > { %v390_v10 = vsel %vm384_vm0, %v389_v9, %v205_v3 }
  0x24   : > { %v207_v11 = vmax.f32 %v390_v10, -128.0 }
  0x26   : > { %v208_v12 = vmin.f32 %v207_v11, 127.0 }
  0x28   : > { %210 = vst [vmem:[#allocation1] ss:$2 sm:$0xff] %v208_v12 }
  0x2f   : > { %v211_v14 = vld.sshfl [vmem:[#allocation1] sm:$0xff pattern:$0x75316420]  ;;  %v212_v15 = vld.sshfl [vmem:[#allocation1 + $0x8] sm:$0xff pattern:$0x75316420] }
  0x30   : > { %v215_v16 = vpack.c.bf16 %v211_v14, %v211_v14  ;;  %v216_v17 = vpack.c.bf16 %v212_v15, %v212_v15 }
  0x32   : > { %v228_v18 = vsel %vm226_vm1, %v215_v16, 0  ;;  %v231_v19 = vsel %vm226_vm1, %v216_v17, 0 }
  0x33   : > { %240 = vmatpush.bf16.msra.mxu0 %v228_v18  ;;  %253 = vmatpush.bf16.msra.mxu1 %v231_v19 }
  0x36   : > { %374 = vmatmul.msk.bf16.vlgmr.msra.gmra.mxu0 %vm222_vm2, %v202_v20  ;;  %375 = vmatmul.msk.bf16.vlgmr.msra.gmra.mxu1 %vm222_vm2, %v202_v20 }
  0x88   : > { %v220_v21 = vpop.permute.xlu0 %219 }
  0xb3   : > { %v242_v22 = vpop.f32.mrf.mxu0  ;;  %v255_v23 = vpop.f32.mrf.mxu1 }
  0xb4   : > { %v243_v24 = vadd.f32 %v242_v22, %v220_v21  ;;  %v256_v25 = vadd.f32 %v255_v23, %v220_v21 }
  0xb6   : > { %v259_v26 = vmul.f32 0.01, %v243_v24  ;;  %v260_v27 = vmul.f32 0.01, %v256_v25 }
  0xb8   : > { %v393_v28 = vcvt.f32.s32 %v259_v26  ;;  %v401_v29 = vcvt.f32.s32 %v260_v27  ;;  %v391_v31 = vand.u32 2147483647, %v259_v26  ;;  %v396_v36 = vand.u32 2147483648, %v259_v26 }
  0xb9   : > { %v399_v37 = vand.u32 2147483647, %v260_v27  ;;  %v404_v39 = vand.u32 2147483648, %v260_v27 }
  0xba   : > { %v394_v30 = vcvt.s32.f32 %v393_v28  ;;  %v402_v32 = vcvt.s32.f32 %v401_v29  ;;  %vm392_vm3 = vcmp.lt.f32.partialorder %v391_v31, 8388608.0 }
  0xbb   : > { %v244_v33 = vpop.f32.mrf.mxu0  ;;  %v257_v34 = vpop.f32.mrf.mxu1  ;;  %vm400_vm4 = vcmp.lt.f32.partialorder %v399_v37, 8388608.0 }
  0xbc   : > { %v395_v35 = vand.u32 2147483647, %v394_v30  ;;  %v403_v38 = vand.u32 2147483647, %v402_v32 }
  0xbe   : > { %v397_v40 = vor.u32 %v396_v36, %v395_v35  ;;  %v405_v41 = vor.u32 %v404_v39, %v403_v38 }
  0xc0   : > { %v398_v42 = vsel %vm392_vm3, %v397_v40, %v259_v26  ;;  %v406_v43 = vsel %vm400_vm4, %v405_v41, %v260_v27 }
  0xc1   : > { %v263_v44 = vmax.f32 %v398_v42, -128.0  ;;  %v264_v45 = vmax.f32 %v406_v43, -128.0 }
  0xc3   : > { %v265_v46 = vmin.f32 %v263_v44, 127.0  ;;  %v266_v47 = vmin.f32 %v264_v45, 127.0 }
  0xc5   : > { %v267_v48 = vmul.f32 0.1, %v265_v46  ;;  %v268_v49 = vmul.f32 0.1, %v266_v47 }
  0xc7   : > { %269 = vst [vmem:[%s188_s21] sm:$0xff] %v267_v48 }
  0xc8   : > { %270 = vst [vmem:[%s188_s21 + $0x8] sm:$0xff] %v268_v49 }
  0xc9   : > { %491 = shalt.err (!%p488_p5)
}
  0xca   : > { %407 = dma.vmem_to_hbm [thread:$0]  (%p605_p4), %s288_s23, 256, %s290_s26, %s272_s15  }
  0xcb PF: > { %p413_p6 = scmp.ge.s32.totalorder %s542_s17, 2  ;;  %s301_s7 = sand.u32 1, %s522_s12  }
  0xcc   : > { %s302_s8 = scalar_lea.sflag [#allocation3], %s301_s7 }
  0xcd   : > { %p410_p7 = pnand %p413_p6, %p612_p8 }
  0xcf   : > { %p411_p9 = pneg %p410_p7 }
  0xd1   : > { %517 = dma.done.wait (%p411_p9), %s302_s8, 256  }
  0xd2   : > { %519 = vsyncadd (%p411_p9), %s302_s8, 4294967040  ;;  %s16_s17 = sadd.s32 1, %s542_s17   ;;  %s678_s12 = smov %s526_s13 }
  0xd3   : > { %p13_p10 = scmp.ge.s32.totalorder %s16_s17, 4   ;;  %s679_s13 = smov %s530_s14 }
  0xd4   : > { %s680_s14 = smov %s618_s25  ;;  %s681_s15 = smov %s538_s16 }
  0xd5   : > { %s682_s16 = smov %s684_s20  ;;  %15 = sbr.rel (!%p13_p10) target bundleno = 4 (0x4), region = 67 }
  0xda   :  { %308 = vsyncpa [#allocation3], 1 }
  0xdb   :  { %310 = vsyncpa [#allocation3 + $0x1], 1 }

</bundles_post_ra>
